<compile_context>
chip_gen: v6e
topology: v6e:2x2x1
jax: 0.10.0
libtpu: 0.0.40
codegen_flags: <defaults>
</compile_context>

<pallas_src>
import functools

import jax
import jax.numpy as jnp
from jax.experimental import pallas as pl
from jax.experimental.pallas import tpu as pltpu


_LANE = 128            # lane width (fast axis)
_SUBLANE = 8           # f32 sublane height
_LANE_PAD_MIN_A = 64   # lane-pad the output only for larger action counts


def _round_up(n, m):
    return (n + m - 1) // m * m


@functools.lru_cache(maxsize=1)
def _tpu_config():
    """Per-generation tiling / VMEM configuration (queried once at trace time)."""
    try:
        kind = jax.devices()[0].device_kind.lower()
    except Exception:
        kind = ""
    if "v5" in kind and ("lite" in kind or "5e" in kind):
        # v5e: 1 TC, 128 MiB VMEM, default scoped only 16 MiB -> raise it.
        return dict(vmem_limit=64 << 20, budget=48 << 20, tb_cap=1024, split=False)
    if "v6" in kind:
        # v6e: 1 TC, 128 MiB VMEM -> big batch tiles amortize per-step overhead.
        return dict(vmem_limit=96 << 20, budget=80 << 20, tb_cap=2048, split=False)
    if "v7" in kind or "7x" in kind:
        # v7x: 2 TCs but only 64 MiB VMEM per TC -> smaller budget, split batch.
        return dict(vmem_limit=48 << 20, budget=40 << 20, tb_cap=1024, split=True)
    # Unknown chip: stay under every generation's default scoped VMEM.
    return dict(vmem_limit=None, budget=12 << 20, tb_cap=512, split=False)


def dueling_q_kernel(x_ref, w_ref, b_ref, q_ref):
    """One MXU matmul with f32 accumulation; bias add stays in f32."""
    acc = jnp.dot(x_ref[...], w_ref[...], preferred_element_type=jnp.float32)
    q_ref[...] = (acc + b_ref[...]).astype(q_ref.dtype)


def make_fused_dueling_params(wv, bv, wa, ba, *, compute_dtype=jnp.float32):
    """Collapse the dueling head into a single (W_eff, b_eff).

    Call once per weight update (NOT per forward) so the O(D*A) fusion, any
    lane padding, and any reduced-precision cast are amortized across steps.

    wv: [D, 1], bv: [1, 1], wa: [D, A], ba: [1, A]  (pre-transposed vs nn.Linear)
    Returns (w_eff [D, A_out], b_eff [1, A_out] float32, num_actions).
    """
    A = wa.shape[1]
    w_eff = wa + wv - jnp.mean(wa, axis=1, keepdims=True)          # [D, A]
    b_eff = ba + bv - jnp.mean(ba, axis=1, keepdims=True)          # [1, A]
    # Lane-dense output only pays off for larger A; small A stays un-padded
    # (full-dim BlockSpec exception) to avoid inflating HBM writeback 128/A-fold.
    if A >= _LANE_PAD_MIN_A and A % _LANE != 0:
        a_out = _round_up(A, _LANE)
        w_eff = jnp.pad(w_eff, ((0, 0), (0, a_out - A)))
        b_eff = jnp.pad(b_eff, ((0, 0), (0, a_out - A)))
    return w_eff.astype(compute_dtype), b_eff.astype(jnp.float32), A


def dueling_q_forward(x, w_eff, b_eff, num_actions, *, out_dtype=None):
    """q = x @ W_eff + b_eff  (exactly the dueling head).

    x: [B, D]; w_eff: [D, A_out]; b_eff: [1, A_out] float32
    (w_eff / b_eff from make_fused_dueling_params).
    """
    B, D = x.shape
    a_out = w_eff.shape[1]
    assert w_eff.shape[0] == D and b_eff.shape == (1, a_out)
    if out_dtype is None:
        out_dtype = x.dtype
    cdt = w_eff.dtype
    if x.dtype != cdt:
        # Reduced-precision MXU path: only x (B*D elements, small) is cast per
        # call; the weight cast was amortized in make_fused_dueling_params.
        x = x.astype(cdt)

    cfg = _tpu_config()

    # --- batch tile: full-dim for tiny batches, else a multiple of 8 rows ----
    if B <= _SUBLANE:
        tb = B                                    # full-array-dim exception
    else:
        b_rows = _round_up(B, _SUBLANE)
        tb = min(cfg["tb_cap"], b_rows)
        if cfg["split"] and b_rows >= 2 * _SUBLANE:
            # v7x only: keep >= 2 batch tiles so ("parallel",) shards across both TCs.
            tb = min(tb, _round_up(b_rows // 2, _SUBLANE))

        x_bytes = jnp.dtype(cdt).itemsize
        out_bytes = jnp.dtype(out_dtype).itemsize
        d_lanes = _round_up(D, _LANE)             # physical VMEM layout padding
        a_lanes = _round_up(a_out, _LANE)
        d_rows = _round_up(D, _SUBLANE)

        def vmem_use(t):
            t8 = _round_up(t, _SUBLANE)
            return (2 * t8 * d_lanes * x_bytes        # double-buffered x tile
                    + 2 * t8 * a_lanes * out_bytes    # double-buffered out tile
                    + 2 * d_rows * a_lanes * x_bytes  # resident fused weight
                    + 2 * _SUBLANE * a_lanes * 4)     # bias block

        while tb > _SUBLANE and vmem_use(tb) > cfg["budget"]:
            tb = _round_up(tb // 2, _SUBLANE)
        tb = max(tb, _SUBLANE)

    grid = (pl.cdiv(B, tb),)          # ragged last batch tile is masked by Pallas

    cp_kwargs = dict(dimension_semantics=("parallel",))
    if cfg["vmem_limit"] is not None:
        cp_kwargs["vmem_limit_bytes"] = cfg["vmem_limit"]

    # NOTE: a further v7x-only option is pipeline_mode=pl.Buffered(1) on the
    # constant-index weight/bias specs to free one resident-weight VMEM copy.
    q = pl.pallas_call(
        dueling_q_kernel,
        out_shape=jax.ShapeDtypeStruct((B, a_out), out_dtype),
        grid_spec=pltpu.PrefetchScalarGridSpec(
            num_scalar_prefetch=0,
            grid=grid,
            in_specs=[
                pl.BlockSpec((tb, D), lambda i: (i, 0)),     # x tile (D = full dim, no pad)
                pl.BlockSpec((D, a_out), lambda i: (0, 0)),  # fused weight (resident)
                pl.BlockSpec((1, a_out), lambda i: (0, 0)),  # fused bias (f32)
            ],
            out_specs=pl.BlockSpec((tb, a_out), lambda i: (i, 0)),
        ),
        compiler_params=pltpu.CompilerParams(**cp_kwargs),
    )(x, w_eff, b_eff)

    if a_out != num_actions:          # only when A was lane-padded (A >= 64)
        q = q[:, :num_actions]
    return q


def reference_forward(x, wv, bv, wa, ba):
    value = x @ wv + bv
    adv = x @ wa + ba
    return value + adv - adv.mean(axis=1, keepdims=True)


if __name__ == "__main__":
    B, D, A = 2, 16, 8   # batch, input_shape[0], num_actions

    key = jax.random.PRNGKey(0)
    kx, kx2, kwv, kbv, kwa, kba = jax.random.split(key, 6)

    x = jax.random.normal(kx, (B, D), dtype=jnp.float32)
    # PyTorch nn.Linear stores weight as [out, in]; we store [in, out].
    wv = jax.random.normal(kwv, (D, 1), dtype=jnp.float32) * 0.1
    bv = jax.random.normal(kbv, (1, 1), dtype=jnp.float32) * 0.1
    wa = jax.random.normal(kwa, (D, A), dtype=jnp.float32) * 0.1
    ba = jax.random.normal(kba, (1, A), dtype=jnp.float32) * 0.1

    q_ref = reference_forward(x, wv, bv, wa, ba)

    # f32 path (fused params computed once, reused across forward calls).
    w_eff, b_eff, n_act = make_fused_dueling_params(wv, bv, wa, ba)
    q = jax.block_until_ready(dueling_q_forward(x, w_eff, b_eff, n_act))
    assert q.shape == (B, A)
    assert jnp.allclose(q, q_ref, atol=1e-5, rtol=1e-5), "f32 mismatch vs reference"

    # Larger / ragged batch: exercises the tiled grid and masked last tile.
    B2 = 50
    x2 = jax.random.normal(kx2, (B2, D), dtype=jnp.float32)
    q2 = jax.block_until_ready(dueling_q_forward(x2, w_eff, b_eff, n_act))
    q2_ref = reference_forward(x2, wv, bv, wa, ba)
    assert q2.shape == (B2, A)
    assert jnp.allclose(q2, q2_ref, atol=1e-5, rtol=1e-5), "tiled-batch mismatch vs reference"

    # bf16 MXU path (halves x/weight HBM traffic at real shapes); f32 accumulate + bias.
    w_bf, b_bf, _ = make_fused_dueling_params(wv, bv, wa, ba, compute_dtype=jnp.bfloat16)
    q_bf = jax.block_until_ready(
        dueling_q_forward(x, w_bf, b_bf, n_act, out_dtype=jnp.float32))
    assert q_bf.shape == (B, A)
    assert jnp.allclose(q_bf, q_ref, atol=5e-2, rtol=5e-2), "bf16 mismatch vs reference"

    print("KERNEL_OK")
</pallas_src>

<mosaic_0001>
module attributes {stable_mosaic.version = 11 : i64} {
  func.func @dueling_q_kernel(%arg0: i32, %arg1: memref<2x16xf32, #tpu.memory_space<vmem>>, %arg2: memref<16x8xf32, #tpu.memory_space<vmem>>, %arg3: memref<1x8xf32, #tpu.memory_space<vmem>>, %arg4: memref<2x8xf32, #tpu.memory_space<vmem>>) attributes {dimension_semantics = [#tpu.dimension_semantics<parallel>], iteration_bounds = array<i64: 1>, scalar_prefetch = 0 : i64, scratch_operands = 0 : i64, tpu.core_type = #tpu.core_type<tc>, window_params = [{transform_indices = @transform_0, window_bounds = array<i64: 2, 16>}, {pipeline_mode = #tpu.pipeline_mode<synchronous>, transform_indices = @transform_1, window_bounds = array<i64: 16, 8>}, {pipeline_mode = #tpu.pipeline_mode<synchronous>, transform_indices = @transform_2, window_bounds = array<i64: 1, 8>}, {transform_indices = @transform_3, window_bounds = array<i64: 2, 8>}]} {
    %c0 = arith.constant 0 : index
    %c0_0 = arith.constant 0 : index
    %0 = vector.load %arg1[%c0, %c0_0] : memref<2x16xf32, #tpu.memory_space<vmem>>, vector<2x16xf32>
    %c0_1 = arith.constant 0 : index
    %c0_2 = arith.constant 0 : index
    %1 = vector.load %arg2[%c0_1, %c0_2] : memref<16x8xf32, #tpu.memory_space<vmem>>, vector<16x8xf32>
    %cst = arith.constant dense<0.000000e+00> : vector<2x8xf32>
    %2 = tpu.matmul %0, %1, %cst {dimension_numbers = #tpu.dot_dimension_numbers<[1], [0], [0], [1], [0, 0, 1, 1], [], []>} : vector<2x16xf32>, vector<16x8xf32>, vector<2x8xf32> -> vector<2x8xf32>
    %c0_3 = arith.constant 0 : index
    %c0_4 = arith.constant 0 : index
    %3 = vector.load %arg3[%c0_3, %c0_4] : memref<1x8xf32, #tpu.memory_space<vmem>>, vector<1x8xf32>
    %4 = vector.broadcast %3 : vector<1x8xf32> to vector<2x8xf32>
    %5 = arith.addf %2, %4 : vector<2x8xf32>
    %c0_5 = arith.constant 0 : index
    %c0_6 = arith.constant 0 : index
    %6 = vector.load %arg4[%c0_5, %c0_6] : memref<2x8xf32, #tpu.memory_space<vmem>>, vector<2x8xf32>
    tpu.vector_store %arg4[%c0_5, %c0_6], %5 {strides = array<i32>} : memref<2x8xf32, #tpu.memory_space<vmem>>, vector<2x8xf32>,
    return
  }
  func.func @transform_0(%arg0: i32) -> (i32, i32) {
    %c0_i32 = arith.constant 0 : i32
    %c0_i32_0 = arith.constant 0 : i32
    return %arg0, %c0_i32 : i32, i32
  }
  func.func @transform_1(%arg0: i32) -> (i32, i32) {
    %c0_i32 = arith.constant 0 : i32
    %c0_i32_0 = arith.constant 0 : i32
    %c0_i32_1 = arith.constant 0 : i32
    return %c0_i32, %c0_i32_0 : i32, i32
  }
  func.func @transform_2(%arg0: i32) -> (i32, i32) {
    %c0_i32 = arith.constant 0 : i32
    %c0_i32_0 = arith.constant 0 : i32
    %c0_i32_1 = arith.constant 0 : i32
    return %c0_i32, %c0_i32_0 : i32, i32
  }
  func.func @transform_3(%arg0: i32) -> (i32, i32) {
    %c0_i32 = arith.constant 0 : i32
    %c0_i32_0 = arith.constant 0 : i32
    return %arg0, %c0_i32 : i32, i32
  }
}

</mosaic_0001>

<bundles_post_ra>
// kernel: tpu_custom_call.1
= control target key start
LH: loop header
LB: loop body
LE: loop exit
PB: predicated region body
PF: predicated region fallthrough
CT: control target
= control target key end

     0   :  { %v152_v1 = vmov 0.0   ;;  %vm153_vm0 = vmmov 0   ;;  %s190_s0 = inlined_call_operand.vmem [shape: f32[2,16], index: 0, kind: input, shape index: {}]   ;;  %s191_s1 = inlined_call_operand.vmem [shape: f32[16,8], index: 1, kind: input, shape index: {}]   ;;  %s192_s2 = inlined_call_operand.vmem [shape: f32[1,8], index: 2, kind: input, shape index: {}]   ;;  %s193_s3 = inlined_call_operand.hbm [shape: f32[2,8], index: 3, kind: output, shape index: {}]  }
   0x1   :  { %v17_v0 = vld [vmem:[%s191_s1 + $0x8] sm:$0xff]  ;;  %120 = vmatprep.subr.mxu0 %v152_v1  ;;  %v16_v2 = vld [vmem:[%s191_s1] sm:$0xff]  ;;  %124 = vmatprep.mubr.msk.f32.mxu0 %vm153_vm0, %v152_v1 }
   0x2   :  { %8 = vsyncpa [#allocation3], 0  ;;  %121 = vmatpush3.msra.mxu0 %v17_v0  ;;  %v15_v3 = vld [vmem:[%s190_s0] sm:$0x3]  ;;  %vm25_vm1 = vcmask 130048   ;;  %s154_s20 = smov [#allocation2]  }
   0x3   :  { %122 = vmatprep.subr.mxu0 %v152_v1  ;;  %v115_v4 = vld [vmem:[%s192_s2] ss:$0 sm:$0xff]  ;;  %s107_s21 = sshll.u32 %s154_s20, 4  ;;  %vm99_vm2 = vcmask 58368   ;;  %s108_s21 = int_to_ptr.vmem [resolvable:$true] %s107_s21 }
   0x4   :  { %123 = vmatpush3.msra.mxu0 %v16_v2  ;;  %s130_s1 = scalar_lea.vmem %s108_s21, 32  ;;  %p135_p1 = scmp.lt.s32.totalorder %s108_s21, %s108_s21 }
   0x5   :  { %125 = vmatmul.mubr.msk.f32.vlgmr.msra.gmra.mxu0 %vm25_vm1, %v15_v3  ;;  %p131_p0 = scmp.ne.s32.totalorder %s108_s21, %s130_s1  ;;  %p136_p2 = scmp.lt.s32.totalorder %s130_s1, %s130_s1 }
   0x7   :  { %p137_p3 = por %p136_p2, %p135_p1 }
   0x9   :  { %p138_p4 = pnand %p137_p3, %p131_p0 }
  0xc5   :  { %v95_v5 = vpop.f32.mrf.mxu0 }
  0xc6   :  { %v96_v6 = vadd.f32 %v115_v4, %v95_v5 }
  0xc7   :  { %v126_v7 = vpop.f32.mrf.mxu0 }
  0xc8   :  { %100 = vst.msk [vmem:[#allocation2] sm:$0x3] %vm99_vm2, %v96_v6 }
  0xc9   :  { %141 = shalt.err (!%p138_p4)
}
  0xca   :  { %110 = dma.vmem_to_hbm [thread:$0]  %s108_s21, 32, %s193_s3, [#allocation3]  }
  0xcb   :  { %150 = dma.done.wait [#allocation3], 32  }
  0xcc   :  { %151 = vsyncadd [#allocation3], 4294967264 }
  0xcd   :  { %114 = vsyncpa [#allocation3], 1 }

</bundles_post_ra>
